<compile_context>
chip_gen: v7x
topology: tpu7x:2x2x1
jax: 0.10.0
libtpu: 0.0.40
codegen_flags: <defaults>
</compile_context>

<pallas_src>
import numpy as np

import jax
import jax.numpy as jnp
from jax.experimental import pallas as pl
from jax.experimental.pallas import tpu as pltpu

GRU_HIDDEN = (64, 32)
GRU_NLAYERS = (1, 1)
N_ACTIONS = 7
EMB_DIM = 64
MEM_SIZE = sum(h * n for h, n in zip(GRU_HIDDEN, GRU_NLAYERS))  # 96
PACK_W = 128  # lane-dense packed output: [logp(7) | value(1) | memory(96) | 0-pad(24)]


# ----------------------------------------------------------------------------
# Single fused Pallas kernel: full forward pass, VMEM-resident intermediates
# ----------------------------------------------------------------------------
def fused_forward_kernel(
    patches1_ref, memory_ref,
    w1_ref, b1_ref,
    sel2_ref, w2_ref, b2_ref,
    sel3_ref, w3_ref, b3_ref,
    g0_wih_ref, g0_whh_ref, g0_bih_ref, g0_bhh_ref,
    g1_wih_ref, g1_whh_ref, g1_bih_ref, g1_bhh_ref,
    head_w_ref, head_b_ref,
    out_ref,
):
    dot = lambda a, b: jnp.dot(a, b, preferred_element_type=jnp.float32)

    # --- conv1 (2x2) + ReLU + fused 2x2 max-pool -----------------------------
    # patches1 packs, per pooled output pixel (row = (b, p, q)), the 4
    # pool-window positions side by side on the lane axis; w1 is block-diagonal
    # so one lane-dense matmul evaluates conv1 at all 4 positions at once.
    h1 = jnp.maximum(dot(patches1_ref[...], w1_ref[...]) + b1_ref[...], 0.0)   # (B*9, 64)
    c1 = 16
    pooled = jnp.maximum(
        jnp.maximum(h1[:, 0 * c1:1 * c1], h1[:, 1 * c1:2 * c1]),
        jnp.maximum(h1[:, 2 * c1:3 * c1], h1[:, 3 * c1:4 * c1]),
    )                                                                          # (B*9, 16)

    # --- conv2 (2x2) + ReLU ---------------------------------------------------
    # One packed (16,128) rhs matmul evaluates all 4 kernel taps at once; the
    # spatial tap gather is a constant 0/1 row-selection matmul per tap (MXU).
    p2 = dot(pooled, w2_ref[...])                                              # (B*9, 128)
    h2 = b2_ref[...]
    for k in range(4):
        h2 = h2 + dot(sel2_ref[k], p2[:, k * 32:(k + 1) * 32])
    h2 = jnp.maximum(h2, 0.0)                                                  # (B*4, 32)

    # --- conv3 (2x2 on a 2x2 map -> 1x1) + ReLU, same packed-tap structure ----
    p3 = dot(h2, w3_ref[...])                                                  # (B*4, 256)
    emb = b3_ref[...]
    for k in range(4):
        emb = emb + dot(sel3_ref[k], p3[:, k * EMB_DIM:(k + 1) * EMB_DIM])
    emb = jnp.maximum(emb, 0.0)                                                # (B, 64)

    # --- stacked GRU cells (seq_len == 1), packed r|z|n gate matmuls ---------
    # PyTorch nn.GRU cell:
    #   r = sigmoid(x Wir^T + bir + h Whr^T + bhr)
    #   z = sigmoid(x Wiz^T + biz + h Whz^T + bhz)
    #   n = tanh   (x Win^T + bin + r * (h Whn^T + bhn))
    #   h' = (1 - z) * n + z * h
    def gru_cell(x, h, wih, whh, bih, bhh, hidden):
        gi = dot(x, wih) + bih                                  # (B, 3H) lane-dense
        gh = dot(h, whh) + bhh                                  # (B, 3H)
        r = jax.nn.sigmoid(gi[:, :hidden] + gh[:, :hidden])
        z = jax.nn.sigmoid(gi[:, hidden:2 * hidden] + gh[:, hidden:2 * hidden])
        n = jnp.tanh(gi[:, 2 * hidden:] + r * gh[:, 2 * hidden:])
        return (1.0 - z) * n + z * h

    mem = memory_ref[...]                                       # (B, 96)
    h0_in = mem[:, :GRU_HIDDEN[0]]                              # construct_states_from_memory
    h1_in = mem[:, GRU_HIDDEN[0]:GRU_HIDDEN[0] + GRU_HIDDEN[1]]
    h0_new = gru_cell(emb, h0_in, g0_wih_ref[...], g0_whh_ref[...],
                      g0_bih_ref[...], g0_bhh_ref[...], GRU_HIDDEN[0])
    h1_new = gru_cell(h0_new, h1_in, g1_wih_ref[...], g1_whh_ref[...],
                      g1_bih_ref[...], g1_bhh_ref[...], GRU_HIDDEN[1])

    # --- fused actor/critic head + log_softmax -------------------------------
    head = dot(h1_new, head_w_ref[...]) + head_b_ref[...]       # (B, 8) = [logits | value]
    logits = head[:, :N_ACTIONS]
    m = jnp.max(logits, axis=-1, keepdims=True)
    s = logits - m
    logp = s - jnp.log(jnp.sum(jnp.exp(s), axis=-1, keepdims=True))
    value = head[:, N_ACTIONS:N_ACTIONS + 1]

    # --- single lane-dense packed output slab ---------------------------------
    # [log_probs | value | new memory (construct_memory_from_states) | 0-pad]
    batch = logp.shape[0]
    pad = jnp.zeros((batch, PACK_W - (N_ACTIONS + 1 + MEM_SIZE)), jnp.float32)
    out_ref[...] = jnp.concatenate([logp, value, h0_new, h1_new, pad], axis=-1)


# ----------------------------------------------------------------------------
# Parameter init (deterministic, mirrors model_init semantics), host-side numpy
# ----------------------------------------------------------------------------
def _orthogonal(rng, rows, cols):
    a = rng.standard_normal((rows, cols))
    q, r = np.linalg.qr(a)
    q = q * np.sign(np.diag(r))
    return np.ascontiguousarray(q, dtype=np.float32)


def _linear_init(rng, out_f, in_f):
    # model_init: normal(0,1), row-normalized, zero bias
    w = rng.standard_normal((out_f, in_f)).astype(np.float32)
    w = w / np.sqrt((w * w).sum(axis=1, keepdims=True))
    return w, np.zeros((out_f,), np.float32)


def init_params(seed=0):
    rng = np.random.default_rng(seed)
    p = {}
    # conv weights in im2col layout (kh*kw*Cin, Cout), patch rows ordered
    # (ky, kx, cin). (To load a real torch checkpoint, permute
    # (Cout,Cin,kh,kw) -> (kh,kw,Cin,Cout).reshape(4*Cin, Cout).)
    w1 = (0.1 * rng.standard_normal((2 * 2 * 3, 16))).astype(np.float32)
    w2 = (0.1 * rng.standard_normal((2 * 2 * 16, 32))).astype(np.float32)
    w3 = (0.1 * rng.standard_normal((2 * 2 * 32, EMB_DIM))).astype(np.float32)

    # conv1 block-diagonal over the 4 pool-window positions (fused conv+pool).
    w1blk = np.zeros((4 * 12, 4 * 16), np.float32)
    for d in range(4):
        w1blk[d * 12:(d + 1) * 12, d * 16:(d + 1) * 16] = w1
    p["conv1_w"] = w1blk                                              # (48, 64)
    p["conv1_b"] = np.zeros((1, 64), np.float32)
    # conv2/conv3 rhs packed over the 4 kernel taps along the lane axis.
    p["conv2_w"] = np.concatenate([w2[k * 16:(k + 1) * 16, :] for k in range(4)], axis=1)  # (16, 128)
    p["conv2_b"] = np.zeros((1, 32), np.float32)
    p["conv3_w"] = np.concatenate([w3[k * 32:(k + 1) * 32, :] for k in range(4)], axis=1)  # (32, 256)
    p["conv3_b"] = np.zeros((1, EMB_DIM), np.float32)

    # GRU 0: input 64 -> hidden 64 ; GRU 1: input 64 -> hidden 32 (r|z|n packed,
    # orthogonal weights / zero biases exactly as model_init does for 'GRU').
    in_dims = (EMB_DIM, GRU_HIDDEN[0])
    for i, (H, K) in enumerate(zip(GRU_HIDDEN, in_dims)):
        p[f"gru{i}_wih_t"] = np.ascontiguousarray(_orthogonal(rng, 3 * H, K).T)   # (K, 3H)
        p[f"gru{i}_whh_t"] = np.ascontiguousarray(_orthogonal(rng, 3 * H, H).T)   # (H, 3H)
        p[f"gru{i}_bih"] = np.zeros((1, 3 * H), np.float32)
        p[f"gru{i}_bhh"] = np.zeros((1, 3 * H), np.float32)

    # fused actor|critic head: (32, 7+1), model_init 'Linear' semantics.
    aw, ab = _linear_init(rng, N_ACTIONS, GRU_HIDDEN[-1])
    cw, cb = _linear_init(rng, 1, GRU_HIDDEN[-1])
    p["head_w"] = np.concatenate([aw.T, cw.T], axis=1)                # (32, 8)
    p["head_b"] = np.concatenate([ab, cb]).reshape(1, N_ACTIONS + 1)
    return {k: jnp.asarray(v) for k, v in p.items()}


# ----------------------------------------------------------------------------
# Host-side (trace-time) constants: selection matrices & conv1 im2col slab
# ----------------------------------------------------------------------------
def _selection_mats(batch):
    # conv2: output row (b, r, s) gathers pooled row (b, r+ky, s+kx) for tap k
    sel2 = np.zeros((4, batch * 4, batch * 9), np.float32)
    for ky in range(2):
        for kx in range(2):
            k = ky * 2 + kx
            for b in range(batch):
                for r in range(2):
                    for s in range(2):
                        sel2[k, b * 4 + r * 2 + s, b * 9 + (r + ky) * 3 + (s + kx)] = 1.0
    # conv3: output row b gathers h2 row (b, ky, kx) for tap k
    sel3 = np.zeros((4, batch, batch * 4), np.float32)
    for k in range(4):
        for b in range(batch):
            sel3[k, b, b * 4 + k] = 1.0
    return jnp.asarray(sel2), jnp.asarray(sel3)


def _pool_grouped_im2col(image):
    # (B,7,7,3) -> (B*9, 48): row = (b, pooled_y p, pooled_x q);
    # lane = (pool pos dy*2+dx)*12 + (conv tap ky*2+kx)*3 + channel
    batch = image.shape[0]
    cols = []
    for dy in range(2):
        for dx in range(2):
            for ky in range(2):
                for kx in range(2):
                    cols.append(image[:, dy + ky:dy + ky + 5:2,
                                      dx + kx:dx + kx + 5:2, :])   # (B,3,3,3)
    return jnp.concatenate(cols, axis=-1).reshape(batch * 9, 48)


# ----------------------------------------------------------------------------
# Forward pass: one pallas_call
# ----------------------------------------------------------------------------
def forward(params, image, memory):
    B = image.shape[0]
    patches1 = _pool_grouped_im2col(image.astype(jnp.float32))
    sel2, sel3 = _selection_mats(B)

    operands = (
        patches1, memory.astype(jnp.float32),
        params["conv1_w"], params["conv1_b"],
        sel2, params["conv2_w"], params["conv2_b"],
        sel3, params["conv3_w"], params["conv3_b"],
        params["gru0_wih_t"], params["gru0_whh_t"], params["gru0_bih"], params["gru0_bhh"],
        params["gru1_wih_t"], params["gru1_whh_t"], params["gru1_bih"], params["gru1_bhh"],
        params["head_w"], params["head_b"],
    )

    def full_spec(shape):
        shape = tuple(int(d) for d in shape)
        ndim = len(shape)
        return pl.BlockSpec(shape, lambda *_: (0,) * ndim)

    out_shape = jax.ShapeDtypeStruct((B, PACK_W), jnp.float32)

    packed = pl.pallas_call(
        fused_forward_kernel,
        out_shape=out_shape,
        grid=(1,),
        in_specs=[full_spec(op.shape) for op in operands],
        out_specs=full_spec(out_shape.shape),
        compiler_params=pltpu.CompilerParams(dimension_semantics=("arbitrary",)),
    )(*operands)

    log_probs = packed[:, :N_ACTIONS]                                   # Categorical log-probs
    value = packed[:, N_ACTIONS]                                        # critic value (squeezed)
    memory_out = packed[:, N_ACTIONS + 1:N_ACTIONS + 1 + MEM_SIZE]      # new memory (B, 96)
    return log_probs, value, memory_out


if __name__ == "__main__":
    params = init_params(seed=0)

    key = jax.random.PRNGKey(0)
    k_img, k_mem = jax.random.split(key)
    # minigrid-style observation image: (batch=2, 7, 7, 3) with small integer codes
    image = jax.random.randint(k_img, (2, 7, 7, 3), 0, 11).astype(jnp.float32)
    memory = jax.random.normal(k_mem, (2, MEM_SIZE), dtype=jnp.float32)

    log_probs, value, memory_out = jax.jit(forward)(params, image, memory)
    jax.block_until_ready((log_probs, value, memory_out))

    assert log_probs.shape == (2, N_ACTIONS)
    assert value.shape == (2,)
    assert memory_out.shape == (2, MEM_SIZE)
    assert bool(jnp.all(jnp.isfinite(log_probs)))
    assert bool(jnp.allclose(jnp.sum(jnp.exp(log_probs), axis=-1), 1.0, atol=1e-5))
    assert bool(jnp.all(jnp.isfinite(value)))
    assert bool(jnp.all(jnp.isfinite(memory_out)))
    print("KERNEL_OK")
</pallas_src>

<mosaic_0001>
module attributes {stable_mosaic.version = 11 : i64} {
  func.func @fused_forward_kernel(%arg0: i32, %arg1: memref<18x48xf32, #tpu.memory_space<vmem>>, %arg2: memref<2x96xf32, #tpu.memory_space<vmem>>, %arg3: memref<48x64xf32, #tpu.memory_space<vmem>>, %arg4: memref<1x64xf32, #tpu.memory_space<vmem>>, %arg5: memref<4x8x18xf32, #tpu.memory_space<vmem>>, %arg6: memref<16x128xf32, #tpu.memory_space<vmem>>, %arg7: memref<1x32xf32, #tpu.memory_space<vmem>>, %arg8: memref<4x2x8xf32, #tpu.memory_space<vmem>>, %arg9: memref<32x256xf32, #tpu.memory_space<vmem>>, %arg10: memref<1x64xf32, #tpu.memory_space<vmem>>, %arg11: memref<64x192xf32, #tpu.memory_space<vmem>>, %arg12: memref<64x192xf32, #tpu.memory_space<vmem>>, %arg13: memref<1x192xf32, #tpu.memory_space<vmem>>, %arg14: memref<1x192xf32, #tpu.memory_space<vmem>>, %arg15: memref<64x96xf32, #tpu.memory_space<vmem>>, %arg16: memref<32x96xf32, #tpu.memory_space<vmem>>, %arg17: memref<1x96xf32, #tpu.memory_space<vmem>>, %arg18: memref<1x96xf32, #tpu.memory_space<vmem>>, %arg19: memref<32x8xf32, #tpu.memory_space<vmem>>, %arg20: memref<1x8xf32, #tpu.memory_space<vmem>>, %arg21: memref<2x128xf32, #tpu.memory_space<vmem>>) attributes {dimension_semantics = [#tpu.dimension_semantics<arbitrary>], iteration_bounds = array<i64: 1>, scalar_prefetch = 0 : i64, scratch_operands = 0 : i64, tpu.core_type = #tpu.core_type<tc>, window_params = [{pipeline_mode = #tpu.pipeline_mode<synchronous>, transform_indices = @transform_0, window_bounds = array<i64: 18, 48>}, {pipeline_mode = #tpu.pipeline_mode<synchronous>, transform_indices = @transform_1, window_bounds = array<i64: 2, 96>}, {pipeline_mode = #tpu.pipeline_mode<synchronous>, transform_indices = @transform_2, window_bounds = array<i64: 48, 64>}, {pipeline_mode = #tpu.pipeline_mode<synchronous>, transform_indices = @transform_3, window_bounds = array<i64: 1, 64>}, {pipeline_mode = #tpu.pipeline_mode<synchronous>, transform_indices = @transform_4, window_bounds = array<i64: 4, 8, 18>}, {pipeline_mode = #tpu.pipeline_mode<synchronous>, transform_indices = @transform_5, window_bounds = array<i64: 16, 128>}, {pipeline_mode = #tpu.pipeline_mode<synchronous>, transform_indices = @transform_6, window_bounds = array<i64: 1, 32>}, {pipeline_mode = #tpu.pipeline_mode<synchronous>, transform_indices = @transform_7, window_bounds = array<i64: 4, 2, 8>}, {pipeline_mode = #tpu.pipeline_mode<synchronous>, transform_indices = @transform_8, window_bounds = array<i64: 32, 256>}, {pipeline_mode = #tpu.pipeline_mode<synchronous>, transform_indices = @transform_9, window_bounds = array<i64: 1, 64>}, {pipeline_mode = #tpu.pipeline_mode<synchronous>, transform_indices = @transform_10, window_bounds = array<i64: 64, 192>}, {pipeline_mode = #tpu.pipeline_mode<synchronous>, transform_indices = @transform_11, window_bounds = array<i64: 64, 192>}, {pipeline_mode = #tpu.pipeline_mode<synchronous>, transform_indices = @transform_12, window_bounds = array<i64: 1, 192>}, {pipeline_mode = #tpu.pipeline_mode<synchronous>, transform_indices = @transform_13, window_bounds = array<i64: 1, 192>}, {pipeline_mode = #tpu.pipeline_mode<synchronous>, transform_indices = @transform_14, window_bounds = array<i64: 64, 96>}, {pipeline_mode = #tpu.pipeline_mode<synchronous>, transform_indices = @transform_15, window_bounds = array<i64: 32, 96>}, {pipeline_mode = #tpu.pipeline_mode<synchronous>, transform_indices = @transform_16, window_bounds = array<i64: 1, 96>}, {pipeline_mode = #tpu.pipeline_mode<synchronous>, transform_indices = @transform_17, window_bounds = array<i64: 1, 96>}, {pipeline_mode = #tpu.pipeline_mode<synchronous>, transform_indices = @transform_18, window_bounds = array<i64: 32, 8>}, {pipeline_mode = #tpu.pipeline_mode<synchronous>, transform_indices = @transform_19, window_bounds = array<i64: 1, 8>}, {pipeline_mode = #tpu.pipeline_mode<synchronous>, transform_indices = @transform_20, window_bounds = array<i64: 2, 128>}]} {
    %c0 = arith.constant 0 : index
    %c0_0 = arith.constant 0 : index
    %0 = vector.load %arg1[%c0, %c0_0] : memref<18x48xf32, #tpu.memory_space<vmem>>, vector<18x48xf32>
    %c0_1 = arith.constant 0 : index
    %c0_2 = arith.constant 0 : index
    %1 = vector.load %arg3[%c0_1, %c0_2] : memref<48x64xf32, #tpu.memory_space<vmem>>, vector<48x64xf32>
    %cst = arith.constant dense<0.000000e+00> : vector<18x64xf32>
    %2 = tpu.matmul %0, %1, %cst {dimension_numbers = #tpu.dot_dimension_numbers<[1], [0], [0], [1], [0, 0, 1, 1], [], []>} : vector<18x48xf32>, vector<48x64xf32>, vector<18x64xf32> -> vector<18x64xf32>
    %c0_3 = arith.constant 0 : index
    %c0_4 = arith.constant 0 : index
    %3 = vector.load %arg4[%c0_3, %c0_4] : memref<1x64xf32, #tpu.memory_space<vmem>>, vector<1x64xf32>
    %4 = vector.broadcast %3 : vector<1x64xf32> to vector<18x64xf32>
    %5 = arith.addf %2, %4 : vector<18x64xf32>
    %cst_5 = arith.constant 0.000000e+00 : f32
    %6 = vector.broadcast %cst_5 : f32 to vector<18x64xf32>
    %7 = arith.maximumf %5, %6 : vector<18x64xf32>
    %8 = vector.extract_strided_slice %7 {offsets = [0, 0], sizes = [18, 16], strides = [1, 1]} : vector<18x64xf32> to vector<18x16xf32>
    %9 = vector.extract_strided_slice %7 {offsets = [0, 16], sizes = [18, 16], strides = [1, 1]} : vector<18x64xf32> to vector<18x16xf32>
    %10 = arith.maximumf %8, %9 : vector<18x16xf32>
    %11 = vector.extract_strided_slice %7 {offsets = [0, 32], sizes = [18, 16], strides = [1, 1]} : vector<18x64xf32> to vector<18x16xf32>
    %12 = vector.extract_strided_slice %7 {offsets = [0, 48], sizes = [18, 16], strides = [1, 1]} : vector<18x64xf32> to vector<18x16xf32>
    %13 = arith.maximumf %11, %12 : vector<18x16xf32>
    %14 = arith.maximumf %10, %13 : vector<18x16xf32>
    %c0_6 = arith.constant 0 : index
    %c0_7 = arith.constant 0 : index
    %15 = vector.load %arg6[%c0_6, %c0_7] : memref<16x128xf32, #tpu.memory_space<vmem>>, vector<16x128xf32>
    %cst_8 = arith.constant dense<0.000000e+00> : vector<18x128xf32>
    %16 = tpu.matmul %14, %15, %cst_8 {dimension_numbers = #tpu.dot_dimension_numbers<[1], [0], [0], [1], [0, 0, 1, 1], [], []>} : vector<18x16xf32>, vector<16x128xf32>, vector<18x128xf32> -> vector<18x128xf32>
    %c0_9 = arith.constant 0 : index
    %c0_10 = arith.constant 0 : index
    %17 = vector.load %arg7[%c0_9, %c0_10] : memref<1x32xf32, #tpu.memory_space<vmem>>, vector<1x32xf32>
    %c0_11 = arith.constant 0 : index
    %c0_12 = arith.constant 0 : index
    %c0_13 = arith.constant 0 : index
    %18 = vector.load %arg5[%c0_11, %c0_12, %c0_13] : memref<4x8x18xf32, #tpu.memory_space<vmem>>, vector<1x8x18xf32>
    %19 = vector.shape_cast %18 : vector<1x8x18xf32> to vector<8x18xf32>
    %20 = vector.extract_strided_slice %16 {offsets = [0, 0], sizes = [18, 32], strides = [1, 1]} : vector<18x128xf32> to vector<18x32xf32>
    %cst_14 = arith.constant dense<0.000000e+00> : vector<8x32xf32>
    %21 = tpu.matmul %19, %20, %cst_14 {dimension_numbers = #tpu.dot_dimension_numbers<[1], [0], [0], [1], [0, 0, 1, 1], [], []>} : vector<8x18xf32>, vector<18x32xf32>, vector<8x32xf32> -> vector<8x32xf32>
    %22 = vector.broadcast %17 : vector<1x32xf32> to vector<8x32xf32>
    %23 = arith.addf %22, %21 : vector<8x32xf32>
    %c1 = arith.constant 1 : index
    %c0_15 = arith.constant 0 : index
    %c0_16 = arith.constant 0 : index
    %24 = vector.load %arg5[%c1, %c0_15, %c0_16] : memref<4x8x18xf32, #tpu.memory_space<vmem>>, vector<1x8x18xf32>
    %25 = vector.shape_cast %24 : vector<1x8x18xf32> to vector<8x18xf32>
    %26 = vector.extract_strided_slice %16 {offsets = [0, 32], sizes = [18, 32], strides = [1, 1]} : vector<18x128xf32> to vector<18x32xf32>
    %cst_17 = arith.constant dense<0.000000e+00> : vector<8x32xf32>
    %27 = tpu.matmul %25, %26, %cst_17 {dimension_numbers = #tpu.dot_dimension_numbers<[1], [0], [0], [1], [0, 0, 1, 1], [], []>} : vector<8x18xf32>, vector<18x32xf32>, vector<8x32xf32> -> vector<8x32xf32>
    %28 = arith.addf %23, %27 : vector<8x32xf32>
    %c2 = arith.constant 2 : index
    %c0_18 = arith.constant 0 : index
    %c0_19 = arith.constant 0 : index
    %29 = vector.load %arg5[%c2, %c0_18, %c0_19] : memref<4x8x18xf32, #tpu.memory_space<vmem>>, vector<1x8x18xf32>
    %30 = vector.shape_cast %29 : vector<1x8x18xf32> to vector<8x18xf32>
    %31 = vector.extract_strided_slice %16 {offsets = [0, 64], sizes = [18, 32], strides = [1, 1]} : vector<18x128xf32> to vector<18x32xf32>
    %cst_20 = arith.constant dense<0.000000e+00> : vector<8x32xf32>
    %32 = tpu.matmul %30, %31, %cst_20 {dimension_numbers = #tpu.dot_dimension_numbers<[1], [0], [0], [1], [0, 0, 1, 1], [], []>} : vector<8x18xf32>, vector<18x32xf32>, vector<8x32xf32> -> vector<8x32xf32>
    %33 = arith.addf %28, %32 : vector<8x32xf32>
    %c3 = arith.constant 3 : index
    %c0_21 = arith.constant 0 : index
    %c0_22 = arith.constant 0 : index
    %34 = vector.load %arg5[%c3, %c0_21, %c0_22] : memref<4x8x18xf32, #tpu.memory_space<vmem>>, vector<1x8x18xf32>
    %35 = vector.shape_cast %34 : vector<1x8x18xf32> to vector<8x18xf32>
    %36 = vector.extract_strided_slice %16 {offsets = [0, 96], sizes = [18, 32], strides = [1, 1]} : vector<18x128xf32> to vector<18x32xf32>
    %cst_23 = arith.constant dense<0.000000e+00> : vector<8x32xf32>
    %37 = tpu.matmul %35, %36, %cst_23 {dimension_numbers = #tpu.dot_dimension_numbers<[1], [0], [0], [1], [0, 0, 1, 1], [], []>} : vector<8x18xf32>, vector<18x32xf32>, vector<8x32xf32> -> vector<8x32xf32>
    %38 = arith.addf %33, %37 : vector<8x32xf32>
    %cst_24 = arith.constant 0.000000e+00 : f32
    %39 = vector.broadcast %cst_24 : f32 to vector<8x32xf32>
    %40 = arith.maximumf %38, %39 : vector<8x32xf32>
    %c0_25 = arith.constant 0 : index
    %c0_26 = arith.constant 0 : index
    %41 = vector.load %arg9[%c0_25, %c0_26] : memref<32x256xf32, #tpu.memory_space<vmem>>, vector<32x256xf32>
    %cst_27 = arith.constant dense<0.000000e+00> : vector<8x256xf32>
    %42 = tpu.matmul %40, %41, %cst_27 {dimension_numbers = #tpu.dot_dimension_numbers<[1], [0], [0], [1], [0, 0, 1, 1], [], []>} : vector<8x32xf32>, vector<32x256xf32>, vector<8x256xf32> -> vector<8x256xf32>
    %c0_28 = arith.constant 0 : index
    %c0_29 = arith.constant 0 : index
    %43 = vector.load %arg10[%c0_28, %c0_29] : memref<1x64xf32, #tpu.memory_space<vmem>>, vector<1x64xf32>
    %c0_30 = arith.constant 0 : index
    %c0_31 = arith.constant 0 : index
    %c0_32 = arith.constant 0 : index
    %44 = vector.load %arg8[%c0_30, %c0_31, %c0_32] : memref<4x2x8xf32, #tpu.memory_space<vmem>>, vector<1x2x8xf32>
    %45 = vector.shape_cast %44 : vector<1x2x8xf32> to vector<2x8xf32>
    %46 = vector.extract_strided_slice %42 {offsets = [0, 0], sizes = [8, 64], strides = [1, 1]} : vector<8x256xf32> to vector<8x64xf32>
    %cst_33 = arith.constant dense<0.000000e+00> : vector<2x64xf32>
    %47 = tpu.matmul %45, %46, %cst_33 {dimension_numbers = #tpu.dot_dimension_numbers<[1], [0], [0], [1], [0, 0, 1, 1], [], []>} : vector<2x8xf32>, vector<8x64xf32>, vector<2x64xf32> -> vector<2x64xf32>
    %48 = vector.broadcast %43 : vector<1x64xf32> to vector<2x64xf32>
    %49 = arith.addf %48, %47 : vector<2x64xf32>
    %c1_34 = arith.constant 1 : index
    %c0_35 = arith.constant 0 : index
    %c0_36 = arith.constant 0 : index
    %50 = vector.load %arg8[%c1_34, %c0_35, %c0_36] : memref<4x2x8xf32, #tpu.memory_space<vmem>>, vector<1x2x8xf32>
    %51 = vector.shape_cast %50 : vector<1x2x8xf32> to vector<2x8xf32>
    %52 = vector.extract_strided_slice %42 {offsets = [0, 64], sizes = [8, 64], strides = [1, 1]} : vector<8x256xf32> to vector<8x64xf32>
    %cst_37 = arith.constant dense<0.000000e+00> : vector<2x64xf32>
    %53 = tpu.matmul %51, %52, %cst_37 {dimension_numbers = #tpu.dot_dimension_numbers<[1], [0], [0], [1], [0, 0, 1, 1], [], []>} : vector<2x8xf32>, vector<8x64xf32>, vector<2x64xf32> -> vector<2x64xf32>
    %54 = arith.addf %49, %53 : vector<2x64xf32>
    %c2_38 = arith.constant 2 : index
    %c0_39 = arith.constant 0 : index
    %c0_40 = arith.constant 0 : index
    %55 = vector.load %arg8[%c2_38, %c0_39, %c0_40] : memref<4x2x8xf32, #tpu.memory_space<vmem>>, vector<1x2x8xf32>
    %56 = vector.shape_cast %55 : vector<1x2x8xf32> to vector<2x8xf32>
    %57 = vector.extract_strided_slice %42 {offsets = [0, 128], sizes = [8, 64], strides = [1, 1]} : vector<8x256xf32> to vector<8x64xf32>
    %cst_41 = arith.constant dense<0.000000e+00> : vector<2x64xf32>
    %58 = tpu.matmul %56, %57, %cst_41 {dimension_numbers = #tpu.dot_dimension_numbers<[1], [0], [0], [1], [0, 0, 1, 1], [], []>} : vector<2x8xf32>, vector<8x64xf32>, vector<2x64xf32> -> vector<2x64xf32>
    %59 = arith.addf %54, %58 : vector<2x64xf32>
    %c3_42 = arith.constant 3 : index
    %c0_43 = arith.constant 0 : index
    %c0_44 = arith.constant 0 : index
    %60 = vector.load %arg8[%c3_42, %c0_43, %c0_44] : memref<4x2x8xf32, #tpu.memory_space<vmem>>, vector<1x2x8xf32>
    %61 = vector.shape_cast %60 : vector<1x2x8xf32> to vector<2x8xf32>
    %62 = vector.extract_strided_slice %42 {offsets = [0, 192], sizes = [8, 64], strides = [1, 1]} : vector<8x256xf32> to vector<8x64xf32>
    %cst_45 = arith.constant dense<0.000000e+00> : vector<2x64xf32>
    %63 = tpu.matmul %61, %62, %cst_45 {dimension_numbers = #tpu.dot_dimension_numbers<[1], [0], [0], [1], [0, 0, 1, 1], [], []>} : vector<2x8xf32>, vector<8x64xf32>, vector<2x64xf32> -> vector<2x64xf32>
    %64 = arith.addf %59, %63 : vector<2x64xf32>
    %cst_46 = arith.constant 0.000000e+00 : f32
    %65 = vector.broadcast %cst_46 : f32 to vector<2x64xf32>
    %66 = arith.maximumf %64, %65 : vector<2x64xf32>
    %c0_47 = arith.constant 0 : index
    %c0_48 = arith.constant 0 : index
    %67 = vector.load %arg2[%c0_47, %c0_48] : memref<2x96xf32, #tpu.memory_space<vmem>>, vector<2x96xf32>
    %68 = vector.extract_strided_slice %67 {offsets = [0, 0], sizes = [2, 64], strides = [1, 1]} : vector<2x96xf32> to vector<2x64xf32>
    %69 = vector.extract_strided_slice %67 {offsets = [0, 64], sizes = [2, 32], strides = [1, 1]} : vector<2x96xf32> to vector<2x32xf32>
    %c0_49 = arith.constant 0 : index
    %c0_50 = arith.constant 0 : index
    %70 = vector.load %arg11[%c0_49, %c0_50] : memref<64x192xf32, #tpu.memory_space<vmem>>, vector<64x192xf32>
    %c0_51 = arith.constant 0 : index
    %c0_52 = arith.constant 0 : index
    %71 = vector.load %arg12[%c0_51, %c0_52] : memref<64x192xf32, #tpu.memory_space<vmem>>, vector<64x192xf32>
    %c0_53 = arith.constant 0 : index
    %c0_54 = arith.constant 0 : index
    %72 = vector.load %arg13[%c0_53, %c0_54] : memref<1x192xf32, #tpu.memory_space<vmem>>, vector<1x192xf32>
    %c0_55 = arith.constant 0 : index
    %c0_56 = arith.constant 0 : index
    %73 = vector.load %arg14[%c0_55, %c0_56] : memref<1x192xf32, #tpu.memory_space<vmem>>, vector<1x192xf32>
    %cst_57 = arith.constant dense<0.000000e+00> : vector<2x192xf32>
    %74 = tpu.matmul %66, %70, %cst_57 {dimension_numbers = #tpu.dot_dimension_numbers<[1], [0], [0], [1], [0, 0, 1, 1], [], []>} : vector<2x64xf32>, vector<64x192xf32>, vector<2x192xf32> -> vector<2x192xf32>
    %75 = vector.broadcast %72 : vector<1x192xf32> to vector<2x192xf32>
    %76 = arith.addf %74, %75 : vector<2x192xf32>
    %cst_58 = arith.constant dense<0.000000e+00> : vector<2x192xf32>
    %77 = tpu.matmul %68, %71, %cst_58 {dimension_numbers = #tpu.dot_dimension_numbers<[1], [0], [0], [1], [0, 0, 1, 1], [], []>} : vector<2x64xf32>, vector<64x192xf32>, vector<2x192xf32> -> vector<2x192xf32>
    %78 = vector.broadcast %73 : vector<1x192xf32> to vector<2x192xf32>
    %79 = arith.addf %77, %78 : vector<2x192xf32>
    %80 = vector.extract_strided_slice %76 {offsets = [0, 0], sizes = [2, 64], strides = [1, 1]} : vector<2x192xf32> to vector<2x64xf32>
    %81 = vector.extract_strided_slice %79 {offsets = [0, 0], sizes = [2, 64], strides = [1, 1]} : vector<2x192xf32> to vector<2x64xf32>
    %82 = arith.addf %80, %81 : vector<2x64xf32>
    %83 = arith.negf %82 : vector<2x64xf32>
    %84 = math.exp %83 : vector<2x64xf32>
    %cst_59 = arith.constant 1.000000e+00 : f32
    %85 = vector.broadcast %cst_59 : f32 to vector<2x64xf32>
    %86 = arith.addf %85, %84 : vector<2x64xf32>
    %87 = arith.divf %85, %86 : vector<2x64xf32>
    %88 = vector.extract_strided_slice %76 {offsets = [0, 64], sizes = [2, 64], strides = [1, 1]} : vector<2x192xf32> to vector<2x64xf32>
    %89 = vector.extract_strided_slice %79 {offsets = [0, 64], sizes = [2, 64], strides = [1, 1]} : vector<2x192xf32> to vector<2x64xf32>
    %90 = arith.addf %88, %89 : vector<2x64xf32>
    %91 = arith.negf %90 : vector<2x64xf32>
    %92 = math.exp %91 : vector<2x64xf32>
    %cst_60 = arith.constant 1.000000e+00 : f32
    %93 = vector.broadcast %cst_60 : f32 to vector<2x64xf32>
    %94 = arith.addf %93, %92 : vector<2x64xf32>
    %95 = arith.divf %93, %94 : vector<2x64xf32>
    %96 = vector.extract_strided_slice %76 {offsets = [0, 128], sizes = [2, 64], strides = [1, 1]} : vector<2x192xf32> to vector<2x64xf32>
    %97 = vector.extract_strided_slice %79 {offsets = [0, 128], sizes = [2, 64], strides = [1, 1]} : vector<2x192xf32> to vector<2x64xf32>
    %98 = arith.mulf %87, %97 : vector<2x64xf32>
    %99 = arith.addf %96, %98 : vector<2x64xf32>
    %100 = math.tanh %99 : vector<2x64xf32>
    %cst_61 = arith.constant 1.000000e+00 : f32
    %101 = vector.broadcast %cst_61 : f32 to vector<2x64xf32>
    %102 = arith.subf %101, %95 : vector<2x64xf32>
    %103 = arith.mulf %102, %100 : vector<2x64xf32>
    %104 = arith.mulf %95, %68 : vector<2x64xf32>
    %105 = arith.addf %103, %104 : vector<2x64xf32>
    %c0_62 = arith.constant 0 : index
    %c0_63 = arith.constant 0 : index
    %106 = vector.load %arg15[%c0_62, %c0_63] : memref<64x96xf32, #tpu.memory_space<vmem>>, vector<64x96xf32>
    %c0_64 = arith.constant 0 : index
    %c0_65 = arith.constant 0 : index
    %107 = vector.load %arg16[%c0_64, %c0_65] : memref<32x96xf32, #tpu.memory_space<vmem>>, vector<32x96xf32>
    %c0_66 = arith.constant 0 : index
    %c0_67 = arith.constant 0 : index
    %108 = vector.load %arg17[%c0_66, %c0_67] : memref<1x96xf32, #tpu.memory_space<vmem>>, vector<1x96xf32>
    %c0_68 = arith.constant 0 : index
    %c0_69 = arith.constant 0 : index
    %109 = vector.load %arg18[%c0_68, %c0_69] : memref<1x96xf32, #tpu.memory_space<vmem>>, vector<1x96xf32>
    %cst_70 = arith.constant dense<0.000000e+00> : vector<2x96xf32>
    %110 = tpu.matmul %105, %106, %cst_70 {dimension_numbers = #tpu.dot_dimension_numbers<[1], [0], [0], [1], [0, 0, 1, 1], [], []>} : vector<2x64xf32>, vector<64x96xf32>, vector<2x96xf32> -> vector<2x96xf32>
    %111 = vector.broadcast %108 : vector<1x96xf32> to vector<2x96xf32>
    %112 = arith.addf %110, %111 : vector<2x96xf32>
    %cst_71 = arith.constant dense<0.000000e+00> : vector<2x96xf32>
    %113 = tpu.matmul %69, %107, %cst_71 {dimension_numbers = #tpu.dot_dimension_numbers<[1], [0], [0], [1], [0, 0, 1, 1], [], []>} : vector<2x32xf32>, vector<32x96xf32>, vector<2x96xf32> -> vector<2x96xf32>
    %114 = vector.broadcast %109 : vector<1x96xf32> to vector<2x96xf32>
    %115 = arith.addf %113, %114 : vector<2x96xf32>
    %116 = vector.extract_strided_slice %112 {offsets = [0, 0], sizes = [2, 32], strides = [1, 1]} : vector<2x96xf32> to vector<2x32xf32>
    %117 = vector.extract_strided_slice %115 {offsets = [0, 0], sizes = [2, 32], strides = [1, 1]} : vector<2x96xf32> to vector<2x32xf32>
    %118 = arith.addf %116, %117 : vector<2x32xf32>
    %119 = arith.negf %118 : vector<2x32xf32>
    %120 = math.exp %119 : vector<2x32xf32>
    %cst_72 = arith.constant 1.000000e+00 : f32
    %121 = vector.broadcast %cst_72 : f32 to vector<2x32xf32>
    %122 = arith.addf %121, %120 : vector<2x32xf32>
    %123 = arith.divf %121, %122 : vector<2x32xf32>
    %124 = vector.extract_strided_slice %112 {offsets = [0, 32], sizes = [2, 32], strides = [1, 1]} : vector<2x96xf32> to vector<2x32xf32>
    %125 = vector.extract_strided_slice %115 {offsets = [0, 32], sizes = [2, 32], strides = [1, 1]} : vector<2x96xf32> to vector<2x32xf32>
    %126 = arith.addf %124, %125 : vector<2x32xf32>
    %127 = arith.negf %126 : vector<2x32xf32>
    %128 = math.exp %127 : vector<2x32xf32>
    %cst_73 = arith.constant 1.000000e+00 : f32
    %129 = vector.broadcast %cst_73 : f32 to vector<2x32xf32>
    %130 = arith.addf %129, %128 : vector<2x32xf32>
    %131 = arith.divf %129, %130 : vector<2x32xf32>
    %132 = vector.extract_strided_slice %112 {offsets = [0, 64], sizes = [2, 32], strides = [1, 1]} : vector<2x96xf32> to vector<2x32xf32>
    %133 = vector.extract_strided_slice %115 {offsets = [0, 64], sizes = [2, 32], strides = [1, 1]} : vector<2x96xf32> to vector<2x32xf32>
    %134 = arith.mulf %123, %133 : vector<2x32xf32>
    %135 = arith.addf %132, %134 : vector<2x32xf32>
    %136 = math.tanh %135 : vector<2x32xf32>
    %cst_74 = arith.constant 1.000000e+00 : f32
    %137 = vector.broadcast %cst_74 : f32 to vector<2x32xf32>
    %138 = arith.subf %137, %131 : vector<2x32xf32>
    %139 = arith.mulf %138, %136 : vector<2x32xf32>
    %140 = arith.mulf %131, %69 : vector<2x32xf32>
    %141 = arith.addf %139, %140 : vector<2x32xf32>
    %c0_75 = arith.constant 0 : index
    %c0_76 = arith.constant 0 : index
    %142 = vector.load %arg19[%c0_75, %c0_76] : memref<32x8xf32, #tpu.memory_space<vmem>>, vector<32x8xf32>
    %cst_77 = arith.constant dense<0.000000e+00> : vector<2x8xf32>
    %143 = tpu.matmul %141, %142, %cst_77 {dimension_numbers = #tpu.dot_dimension_numbers<[1], [0], [0], [1], [0, 0, 1, 1], [], []>} : vector<2x32xf32>, vector<32x8xf32>, vector<2x8xf32> -> vector<2x8xf32>
    %c0_78 = arith.constant 0 : index
    %c0_79 = arith.constant 0 : index
    %144 = vector.load %arg20[%c0_78, %c0_79] : memref<1x8xf32, #tpu.memory_space<vmem>>, vector<1x8xf32>
    %145 = vector.broadcast %144 : vector<1x8xf32> to vector<2x8xf32>
    %146 = arith.addf %143, %145 : vector<2x8xf32>
    %147 = vector.extract_strided_slice %146 {offsets = [0, 0], sizes = [2, 7], strides = [1, 1]} : vector<2x8xf32> to vector<2x7xf32>
    %cst_80 = arith.constant dense<0xFF800000> : vector<2xf32>
    %148 = vector.multi_reduction <maximumf>, %147, %cst_80 [1] : vector<2x7xf32> to vector<2xf32>
    %149 = vector.shape_cast %148 : vector<2xf32> to vector<2x1xf32>
    %150 = vector.broadcast %149 : vector<2x1xf32> to vector<2x7xf32>
    %151 = arith.subf %147, %150 : vector<2x7xf32>
    %152 = math.exp %151 : vector<2x7xf32>
    %cst_81 = arith.constant dense<0.000000e+00> : vector<2xf32>
    %153 = vector.multi_reduction <add>, %152, %cst_81 [1] : vector<2x7xf32> to vector<2xf32>
    %154 = vector.shape_cast %153 : vector<2xf32> to vector<2x1xf32>
    %155 = math.log %154 : vector<2x1xf32>
    %156 = vector.broadcast %155 : vector<2x1xf32> to vector<2x7xf32>
    %157 = arith.subf %151, %156 : vector<2x7xf32>
    %158 = vector.extract_strided_slice %146 {offsets = [0, 7], sizes = [2, 1], strides = [1, 1]} : vector<2x8xf32> to vector<2x1xf32>
    %cst_82 = arith.constant 0.000000e+00 : f32
    %159 = vector.broadcast %cst_82 : f32 to vector<2x24xf32>
    %160 = tpu.concatenate %157, %158, %105, %141, %159 in 1 : vector<2x7xf32>, vector<2x1xf32>, vector<2x64xf32>, vector<2x32xf32>, vector<2x24xf32> -> vector<2x128xf32>
    %c0_83 = arith.constant 0 : index
    %c0_84 = arith.constant 0 : index
    %161 = vector.load %arg21[%c0_83, %c0_84] : memref<2x128xf32, #tpu.memory_space<vmem>>, vector<2x128xf32>
    tpu.vector_store %arg21[%c0_83, %c0_84], %160 {strides = array<i32>} : memref<2x128xf32, #tpu.memory_space<vmem>>, vector<2x128xf32>,
    return
  }
  func.func @transform_0(%arg0: i32) -> (i32, i32) {
    %c0_i32 = arith.constant 0 : i32
    %c0_i32_0 = arith.constant 0 : i32
    %c0_i32_1 = arith.constant 0 : i32
    return %c0_i32, %c0_i32_0 : i32, i32
  }
  func.func @transform_1(%arg0: i32) -> (i32, i32) {
    %c0_i32 = arith.constant 0 : i32
    %c0_i32_0 = arith.constant 0 : i32
    %c0_i32_1 = arith.constant 0 : i32
    return %c0_i32, %c0_i32_0 : i32, i32
  }
  func.func @transform_2(%arg0: i32) -> (i32, i32) {
    %c0_i32 = arith.constant 0 : i32
    %c0_i32_0 = arith.constant 0 : i32
    %c0_i32_1 = arith.constant 0 : i32
    return %c0_i32, %c0_i32_0 : i32, i32
  }
  func.func @transform_3(%arg0: i32) -> (i32, i32) {
    %c0_i32 = arith.constant 0 : i32
    %c0_i32_0 = arith.constant 0 : i32
    %c0_i32_1 = arith.constant 0 : i32
    return %c0_i32, %c0_i32_0 : i32, i32
  }
  func.func @transform_4(%arg0: i32) -> (i32, i32, i32) {
    %c0_i32 = arith.constant 0 : i32
    %c0_i32_0 = arith.constant 0 : i32
    %c0_i32_1 = arith.constant 0 : i32
    %c0_i32_2 = arith.constant 0 : i32
    return %c0_i32, %c0_i32_0, %c0_i32_1 : i32, i32, i32
  }
  func.func @transform_5(%arg0: i32) -> (i32, i32) {
    %c0_i32 = arith.constant 0 : i32
    %c0_i32_0 = arith.constant 0 : i32
    %c0_i32_1 = arith.constant 0 : i32
    return %c0_i32, %c0_i32_0 : i32, i32
  }
  func.func @transform_6(%arg0: i32) -> (i32, i32) {
    %c0_i32 = arith.constant 0 : i32
    %c0_i32_0 = arith.constant 0 : i32
    %c0_i32_1 = arith.constant 0 : i32
    return %c0_i32, %c0_i32_0 : i32, i32
  }
  func.func @transform_7(%arg0: i32) -> (i32, i32, i32) {
    %c0_i32 = arith.constant 0 : i32
    %c0_i32_0 = arith.constant 0 : i32
    %c0_i32_1 = arith.constant 0 : i32
    %c0_i32_2 = arith.constant 0 : i32
    return %c0_i32, %c0_i32_0, %c0_i32_1 : i32, i32, i32
  }
  func.func @transform_8(%arg0: i32) -> (i32, i32) {
    %c0_i32 = arith.constant 0 : i32
    %c0_i32_0 = arith.constant 0 : i32
    %c0_i32_1 = arith.constant 0 : i32
    return %c0_i32, %c0_i32_0 : i32, i32
  }
  func.func @transform_9(%arg0: i32) -> (i32, i32) {
    %c0_i32 = arith.constant 0 : i32
    %c0_i32_0 = arith.constant 0 : i32
    %c0_i32_1 = arith.constant 0 : i32
    return %c0_i32, %c0_i32_0 : i32, i32
  }
  func.func @transform_10(%arg0: i32) -> (i32, i32) {
    %c0_i32 = arith.constant 0 : i32
    %c0_i32_0 = arith.constant 0 : i32
    %c0_i32_1 = arith.constant 0 : i32
    return %c0_i32, %c0_i32_0 : i32, i32
  }
  func.func @transform_11(%arg0: i32) -> (i32, i32) {
    %c0_i32 = arith.constant 0 : i32
    %c0_i32_0 = arith.constant 0 : i32
    %c0_i32_1 = arith.constant 0 : i32
    return %c0_i32, %c0_i32_0 : i32, i32
  }
  func.func @transform_12(%arg0: i32) -> (i32, i32) {
    %c0_i32 = arith.constant 0 : i32
    %c0_i32_0 = arith.constant 0 : i32
    %c0_i32_1 = arith.constant 0 : i32
    return %c0_i32, %c0_i32_0 : i32, i32
  }
  func.func @transform_13(%arg0: i32) -> (i32, i32) {
    %c0_i32 = arith.constant 0 : i32
    %c0_i32_0 = arith.constant 0 : i32
    %c0_i32_1 = arith.constant 0 : i32
    return %c0_i32, %c0_i32_0 : i32, i32
  }
  func.func @transform_14(%arg0: i32) -> (i32, i32) {
    %c0_i32 = arith.constant 0 : i32
    %c0_i32_0 = arith.constant 0 : i32
    %c0_i32_1 = arith.constant 0 : i32
    return %c0_i32, %c0_i32_0 : i32, i32
  }
  func.func @transform_15(%arg0: i32) -> (i32, i32) {
    %c0_i32 = arith.constant 0 : i32
    %c0_i32_0 = arith.constant 0 : i32
    %c0_i32_1 = arith.constant 0 : i32
    return %c0_i32, %c0_i32_0 : i32, i32
  }
  func.func @transform_16(%arg0: i32) -> (i32, i32) {
    %c0_i32 = arith.constant 0 : i32
    %c0_i32_0 = arith.constant 0 : i32
    %c0_i32_1 = arith.constant 0 : i32
    return %c0_i32, %c0_i32_0 : i32, i32
  }
  func.func @transform_17(%arg0: i32) -> (i32, i32) {
    %c0_i32 = arith.constant 0 : i32
    %c0_i32_0 = arith.constant 0 : i32
    %c0_i32_1 = arith.constant 0 : i32
    return %c0_i32, %c0_i32_0 : i32, i32
  }
  func.func @transform_18(%arg0: i32) -> (i32, i32) {
    %c0_i32 = arith.constant 0 : i32
    %c0_i32_0 = arith.constant 0 : i32
    %c0_i32_1 = arith.constant 0 : i32
    return %c0_i32, %c0_i32_0 : i32, i32
  }
  func.func @transform_19(%arg0: i32) -> (i32, i32) {
    %c0_i32 = arith.constant 0 : i32
    %c0_i32_0 = arith.constant 0 : i32
    %c0_i32_1 = arith.constant 0 : i32
    return %c0_i32, %c0_i32_0 : i32, i32
  }
  func.func @transform_20(%arg0: i32) -> (i32, i32) {
    %c0_i32 = arith.constant 0 : i32
    %c0_i32_0 = arith.constant 0 : i32
    %c0_i32_1 = arith.constant 0 : i32
    return %c0_i32, %c0_i32_0 : i32, i32
  }
}

</mosaic_0001>

<bundles_post_ra>
// kernel: forward.1
= control target key start
LH: loop header
LB: loop body
LE: loop exit
PB: predicated region body
PF: predicated region fallthrough
CT: control target
= control target key end

     0   :  { %v1960_v0 = vmov 0.0|0.0   ;;  %vm1961_vm0 = vmmov 0   ;;  %v1962_v4 = vmov 0.0   ;;  %vm81_vm1 = vcmask 392192   ;;  %s1964_s21 = smov 96   ;;  %s1967_s27 = smov 72   ;;  %s2431_s2 = inlined_call_operand.vmem [shape: f32[48,64], index: 2, kind: input, shape index: {}]   ;;  %s2432_s0 = inlined_call_operand.vmem [shape: f32[18,48], index: 0, kind: input, shape index: {}]   ;;  %s2433_s3 = inlined_call_operand.vmem [shape: f32[1,64], index: 3, kind: input, shape index: {}]   ;;  %s2434_s5 = inlined_call_operand.vmem [shape: f32[16,128], index: 5, kind: input, shape index: {}]   ;;  %s2435_s4 = inlined_call_operand.vmem [shape: f32[4,8,18], index: 4, kind: input, shape index: {}]   ;;  %s2436_s8 = inlined_call_operand.vmem [shape: f32[32,256], index: 8, kind: input, shape index: {}]   ;;  %s2437_s6 = inlined_call_operand.vmem [shape: f32[1,32], index: 6, kind: input, shape index: {}]   ;;  %s2438_s7 = inlined_call_operand.vmem [shape: f32[4,2,8], index: 7, kind: input, shape index: {}]   ;;  %s2439_s10 = inlined_call_operand.vmem [shape: f32[64,192], index: 10, kind: input, shape index: {}]   ;;  %s2440_s11 = inlined_call_operand.vmem [shape: f32[64,192], index: 11, kind: input, shape index: {}]   ;;  %s2441_s1 = inlined_call_operand.vmem [shape: f32[2,96], index: 1, kind: input, shape index: {}]   ;;  %s2442_s9 = inlined_call_operand.vmem [shape: f32[1,64], index: 9, kind: input, shape index: {}]   ;;  %s2443_s15 = inlined_call_operand.vmem [shape: f32[32,96], index: 15, kind: input, shape index: {}]   ;;  %s2444_s13 = inlined_call_operand.vmem [shape: f32[1,192], index: 13, kind: input, shape index: {}]   ;;  %s2445_s12 = inlined_call_operand.vmem [shape: f32[1,192], index: 12, kind: input, shape index: {}]   ;;  %s2446_s14 = inlined_call_operand.vmem [shape: f32[64,96], index: 14, kind: input, shape index: {}]   ;;  %s2447_s17 = inlined_call_operand.vmem [shape: f32[1,96], index: 17, kind: input, shape index: {}]   ;;  %s2448_s16 = inlined_call_operand.vmem [shape: f32[1,96], index: 16, kind: input, shape index: {}]   ;;  %s2449_s18 = inlined_call_operand.vmem [shape: f32[32,8], index: 18, kind: input, shape index: {}]   ;;  %s2450_s19 = inlined_call_operand.vmem [shape: f32[1,8], index: 19, kind: input, shape index: {}]   ;;  %s2451_s20 = inlined_call_operand.vmem [shape: f32[2,128], index: 20, kind: output, shape index: {}]  }
   0x1   :  { %2456 = sst [smem:[#allocation2_spill]] %s2431_s2  ;;  %1819 = vmatprep.subr.bf16.mxu0 %v1960_v0  ;;  %1700 = vmatprep.mubr.msk.f32.mxu0 %vm1961_vm0, %v1962_v4  ;;  %s1963_s2 = smov 112   ;;  %vm206_vm2 = vcmask 130048   ;;  %vm302_vm3 = vcmask 1041408   ;;  %vm298_vm4 = vcmask 146432   ;;  %v645_v51 = vld [vmem:[%s2436_s8 + $0x8] sm:$0xff] }
   0x2   :  { %2457 = sst [smem:[#allocation3_spill]] %s2432_s0  ;;  %s2461_s23 = sld [smem:[#allocation2_spill]]  ;;  %1828 = vmatprep.subr.bf16.mxu1 %v1960_v0  ;;  %1713 = vmatprep.mubr.msk.f32.mxu1 %vm1961_vm0, %v1962_v4  ;;  %v647_v52 = vld [vmem:[%s2436_s8 + $0x18] sm:$0xff]  ;;  %v644_v53 = vld [vmem:[%s2436_s8] sm:$0xff]  ;;  %v646_v55 = vld [vmem:[%s2436_s8 + $0x10] sm:$0xff]  ;;  %vm652_vm5 = vcmask 261120  }
   0x3   :  { %2458 = sst [smem:[#allocation4_spill]] %s2433_s3  ;;  %s2462_s0 = sld [smem:[#allocation3_spill]]  ;;  %v1843_v54 = vpack.c.bf16 %v647_v52, %v645_v51  ;;  %v1845_v56 = vpack.c.bf16 %v646_v55, %v644_v53  ;;  %vm729_vm6 = vcmask 64512   ;;  %v1064_v52 = vld [vmem:[%s2440_s11] sm:$0xff]  ;;  %v1066_v53 = vld [vmem:[%s2440_s11 + $0x10] sm:$0xff]  ;;  %v1071_v55 = vld [vmem:[%s2440_s11 + $0x38] sm:$0xff] }
   0x4   :  { %2459 = sst [smem:[#allocation5_spill]] %s2434_s5  ;;  %s2463_s26 = sld [smem:[#allocation4_spill]]  ;;  %vm1093_vm7 = vcmask 523264   ;;  %vm1562_vm8 = vcmask 50176   ;;  %vm1581_vm9 = vcmask 56320   ;;  %vm1584_vm10 = vcmask 588800  }
   0x5   :  { %2460 = sst [smem:[#allocation6_spill]] %s2435_s4  ;;  %s2464_s4 = sld [smem:[#allocation5_spill]]  ;;  %vm1586_vm11 = vcmask 850944  }
   0x6   :  { %s2465_s24 = sld [smem:[#allocation6_spill]]  ;;  %s1966_s3 = smov 32  }
   0x8   :  { %v68_v1 = vld [vmem:[%s2461_s23] sm:$0xff]  ;;  %v69_v2 = vld [vmem:[%s2461_s23 + $0x8] sm:$0xff]  ;;  %v70_v3 = vld [vmem:[%s2461_s23 + $0x10] sm:$0xff] }
   0x9   :  { %v1820_v5 = vpack.c.bf16 %v69_v2, %v68_v1  ;;  %v71_v6 = vld [vmem:[%s2461_s23 + $0x18] sm:$0xff]  ;;  %v72_v8 = vld [vmem:[%s2461_s23 + $0x20] sm:$0xff]  ;;  %v73_v9 = vld [vmem:[%s2461_s23 + $0x28] sm:$0xff]  ;;  %s1965_s23 = smov 64  }
   0xa   :  { %v1823_v7 = vpack.c.bf16 %v71_v6, %v70_v3  ;;  %v1826_v10 = vpack.c.bf16 %v73_v9, %v72_v8  ;;  %v65_v11 = vld [vmem:[%s2462_s0] sm:$0xff]  ;;  %v66_v12 = vld [vmem:[%s2462_s0 + $0x8] sm:$0xff]  ;;  %v67_v13 = vld [vmem:[%s2462_s0 + $0x10] sm:$0x3] }
   0xb   :  { %1821 = vmatpush3.bf16.msra.mxu0 %v1820_v5  ;;  %v1593_v14 = vld [vmem:[%s2463_s26] ss:$0 sm:$0xff]  ;;  %v205_v20 = vld [vmem:[%s2464_s4 + $0x8] sm:$0xff] }
   0xc   :  { %1822 = vmatprep.subr.bf16.mxu0 %v1960_v0  ;;  %v204_v19 = vld [vmem:[%s2464_s4] sm:$0xff]  ;;  %v1603_v1 = vld [vmem:[%s2465_s24 + $0x8] sm:$0xff]  ;;  %v1606_v9 = vld [vmem:[%s2465_s24 + $0x10] sm:$0xff] }
   0xd   :  { %v1829_v22 = vpack.c.bf16 %v205_v20, %v204_v19  ;;  %v297_v50 = vld [vmem:[%s2465_s24] sm:$0xff] }
   0xe   :  { %v1602_v19 = vld [vmem:[%s2437_s6] ss:$0 sm:$0xff] }
   0xf   :  { %1824 = vmatpush3.bf16.msra.mxu0 %v1823_v7  ;;  %1830 = vmatpush3.bf16.msra.mxu1 %v1829_v22 }
  0x10   :  { %1825 = vmatprep.subr.bf16.mxu0 %v1960_v0  ;;  %1831 = vmatprep.subr.bf16.mxu1 %v1960_v0 }
  0x13   :  { %1827 = vmatpush3.bf16.msra.mxu0 %v1826_v10 }
  0x14   :  { %1844 = vmatprep.subr.bf16.mxu0 %v1843_v54  ;;  %v1069_v54 = vld [vmem:[%s2440_s11 + $0x28] sm:$0xff] }
  0x16   :  { %1701 = vmatmul.mubr.msk.f32.vlgmr.msra.gmra.mrb[0].mxu0 %vm81_vm1, %v65_v11 }
  0x17   :  { %1703 = vmatprep.mubr.msk.f32.mxu0 %vm1961_vm0, %v1962_v4  ;;  %1846 = vmatpush1.bf16.msra.mxu0 %v1845_v56  ;;  %v1619_v56 = vld [vmem:[%s2438_s7 + $0x6] sm:$0x3] }
  0x1a   :  { %1704 = vmatmul.mubr.msk.f32.gmra.mrb[2].mxu0 %vm81_vm1, %v66_v12  ;;  %v1609_v12 = vld [vmem:[%s2465_s24 + $0x18] sm:$0xff] }
  0x1b   :  { %1706 = vmatprep.mubr.msk.f32.mxu0 %vm1961_vm0, %v1962_v4 }
  0x1e   :  { %1707 = vmatmul.mubr.msk.f32.gmra.mrb[4].mxu0 %vm81_vm1, %v67_v13  ;;  %v649_v13 = vld [vmem:[%s2436_s8 + $0x28] sm:$0xff] }
  0x1f   :  { %720 = vmatprep.mubr.f32.mxu0 %v1962_v4 }
  0xe9   :  { %v157_v15 = vpop.f32.mrb[0].mxu0 }
  0xea   :  { %v158_v16 = vadd.f32 %v1593_v14, %v157_v15  ;;  %v1702_v17 = vpop.f32.mrb[1].mxu0 }
  0xeb   :  { %v650_v17 = vld [vmem:[%s2436_s8 + $0x30] sm:$0xff] }
  0xec   :  { %v171_v18 = vmax.f32 %v158_v16, 0.0  ;;  %v648_v16 = vld [vmem:[%s2436_s8 + $0x20] sm:$0xff] }
  0xed   :  { %v162_v21 = vpop.f32.mrb[2].mxu0 }
  0xee   :  { %v163_v23 = vadd.f32 %v1593_v14, %v162_v21  ;;  %177 = vrot.lane.b32.xlu0 %v171_v18, %s1963_s2  ;;  %v1705_v24 = vpop.f32.mrb[3].mxu0 }
  0xef   :  { %v728_v24 = vld [vmem:[%s2438_s7] sm:$0x3] }
  0xf0   :  { %v172_v25 = vmax.f32 %v163_v23, 0.0 }
  0xf1   :  { %v167_v26 = vpop.f32.mrb[4].mxu0 }
  0xf2   :  { %v168_v27 = vadd.f32 %v1593_v14, %v167_v26  ;;  %179 = vrot.lane.b32.xlu0 %v172_v25, %s1963_s2  ;;  %v1708_v28 = vpop.f32.mrb[5].mxu0  ;;  %v651_v14 = vld [vmem:[%s2436_s8 + $0x38] sm:$0xff] }
  0xf3   :  { %v1847_v15 = vpack.c.bf16 %v651_v14, %v649_v13  ;;  %v1051_v28 = vld [vmem:[%s2439_s10 + $0x18] sm:$0xff]  ;;  %v1076_v13 = vld [vmem:[%s2440_s11 + $0x60] sm:$0xff] }
  0xf4   :  { %v173_v29 = vmax.f32 %v168_v27, 0.0  ;;  %v1049_v27 = vld [vmem:[%s2439_s10 + $0x8] sm:$0xff] }
  0xf5   :  { %1848 = vmatprep.subr.bf16.mxu0 %v1847_v15  ;;  %v1060_v15 = vld [vmem:[%s2439_s10 + $0x60] sm:$0xff] }
  0xf6   :  { %181 = vrot.lane.b32.xlu1 %v173_v29, %s1963_s2 }
 0x160   :  { %v178_v30 = vpop.permute.xlu0 %177 }
 0x161   :  { %v186_v31 = vmax.f32 %v171_v18, %v178_v30  ;;  %v1849_v18 = vpack.c.bf16 %v650_v17, %v648_v16  ;;  %v1048_v30 = vld [vmem:[%s2439_s10] sm:$0xff]  ;;  %v1062_v16 = vld [vmem:[%s2439_s10 + $0x70] sm:$0xff] }
 0x162   :  { %v1078_v17 = vld [vmem:[%s2440_s11 + $0x70] sm:$0xff] }
 0x163   :  { %192 = vrot.lane.b32.xlu1 %v186_v31, %s1964_s21  ;;  %1850 = vmatpush1.bf16.msra.mxu0 %v1849_v18  ;;  %v1865_v18 = vpack.c.bf16 %v1062_v16, %v1060_v15 }
 0x164   :  { %v180_v32 = vpop.permute.xlu0 %179  ;;  %1763 = vmatprep.subr.mxu0 %v1962_v4 }
 0x165   :  { %v187_v33 = vmax.f32 %v172_v25, %v180_v32 }
 0x167   :  { %194 = vrot.lane.b32.xlu0 %v187_v33, %s1964_s21 }
 0x168   :  { %v182_v34 = vpop.permute.xlu1 %181 }
 0x169   :  { %v188_v35 = vmax.f32 %v173_v29, %v182_v34  ;;  %v1851_v29 = vpack.c.bf16 %v1051_v28, %v1049_v27  ;;  %v1055_v34 = vld [vmem:[%s2439_s10 + $0x38] sm:$0xff] }
 0x16b   :  { %196 = vrot.lane.b32.xlu1 %v188_v35, %s1964_s21 }
 0x1d5   :  { %v193_v36 = vpop.permute.xlu1 %192 }
 0x1d6   :  { %v201_v37 = vmax.f32 %v186_v31, %v193_v36  ;;  %v1050_v31 = vld [vmem:[%s2439_s10 + $0x10] sm:$0xff]  ;;  %v1052_v36 = vld [vmem:[%s2439_s10 + $0x20] sm:$0xff] }
 0x1d7   :  { %v1853_v32 = vpack.c.bf16 %v1050_v31, %v1048_v30  ;;  %v1283_v30 = vld [vmem:[%s2443_s15 + $0x8] sm:$0xff]  ;;  %v1284_v31 = vld [vmem:[%s2443_s15 + $0x10] sm:$0xff] }
 0x1d8   :  { %1714 = vmatmul.mubr.msk.f32.vlgmr.msra.gmra.mrb[0].mxu1 %vm206_vm2, %v201_v37  ;;  %v1054_v37 = vld [vmem:[%s2439_s10 + $0x30] sm:$0xff] }
 0x1d9   :  { %v195_v38 = vpop.permute.xlu0 %194  ;;  %1716 = vmatprep.mubr.msk.f32.mxu1 %vm1961_vm0, %v1962_v4 }
 0x1da   :  { %v202_v39 = vmax.f32 %v187_v33, %v195_v38  ;;  %v1053_v33 = vld [vmem:[%s2439_s10 + $0x28] sm:$0xff]  ;;  %v1857_v38 = vpack.c.bf16 %v1054_v37, %v1052_v36  ;;  %v1083_v36 = vlaneseq }
 0x1dc   :  { %1717 = vmatmul.mubr.msk.f32.gmra.mrb[2].mxu1 %vm206_vm2, %v202_v39  ;;  %v1057_v39 = vld [vmem:[%s2439_s10 + $0x48] sm:$0xff]  ;;  %v1084_v37 = vshrl.u32 %v1083_v36, 7 }
 0x1dd   :  { %v197_v40 = vpop.permute.xlu1 %196  ;;  %1719 = vmatprep.mubr.msk.f32.mxu1 %vm1961_vm0, %v1962_v4 }
 0x1de   :  { %v203_v41 = vmax.f32 %v188_v35, %v197_v40  ;;  %v1855_v35 = vpack.c.bf16 %v1055_v34, %v1053_v33  ;;  %v1059_v40 = vld [vmem:[%s2439_s10 + $0x58] sm:$0xff] }
 0x1df   :  { %v1285_v33 = vld [vmem:[%s2443_s15 + $0x18] sm:$0xff] }
 0x1e0   :  { %1720 = vmatmul.mubr.msk.f32.gmra.mrb[4].mxu1 %vm206_vm2, %v203_v41  ;;  %v1859_v41 = vpack.c.bf16 %v1059_v40, %v1057_v39  ;;  %v1899_v34 = vpack.c.bf16 %v1285_v33, %v1284_v31  ;;  %v1081_v39 = vld [vmem:[%s2444_s13] sm:$0x3] }
 0x1e1   :  { %1728 = vmatprep.mubr.msk.f32.mxu1 %vm1961_vm0, %v1962_v4  ;;  %v1080_v40 = vld [vmem:[%s2445_s12] sm:$0x3] }
 0x1e2   :  { %v1476_v33 = vld [vmem:[%s2449_s18] sm:$0xff] }
 0x2ab   :  { %v282_v42 = vpop.f32.mrb[0].mxu1 }
 0x2ac   :  { %v1715_v43 = vpop.f32.mrb[1].mxu1 }
 0x2ad   :  { %v1058_v43 = vld [vmem:[%s2439_s10 + $0x50] sm:$0xff] }
 0x2af   :  { %v287_v44 = vpop.f32.mrb[2].mxu1 }
 0x2b0   :  { %v1832_v45 = vpack.c.bf16 %v287_v44, %v282_v42  ;;  %v1718_v46 = vpop.f32.mrb[3].mxu1  ;;  %v1929_v47 = vpack.i.bf16 %v287_v44, %v282_v42  ;;  %v1056_v42 = vld [vmem:[%s2439_s10 + $0x40] sm:$0xff] }
 0x2b1   :  { %v1861_v44 = vpack.c.bf16 %v1058_v43, %v1056_v42 }
 0x2b2   :  { %1930 = vrot.lane.b32.xlu0 %v1929_v47, %s1964_s21  ;;  %1833 = vmatpush3.bf16.msra.mxu1 %v1832_v45  ;;  %v1615_v45 = vld [vmem:[%s2438_s7 + $0x2] sm:$0x3] }
 0x2b3   :  { %v292_v48 = vpop.f32.mrb[4].mxu1  ;;  %1726 = vmatprep.subr.mxu1 %v1962_v4 }
 0x2b4   :  { %391 = vrot.lane.b32.xlu1 %v292_v48, %s1964_s21  ;;  %v1721_v49 = vpop.f32.mrb[5].mxu1 }
 0x2b5   :  { %v1617_v49 = vld [vmem:[%s2438_s7 + $0x4] sm:$0x3] }
 0x2b6   :  { %1935 = vrot.lane.b32.xlu0 %v1929_v47, %s1965_s23  ;;  %1727 = vmatpush3.msk.msra.mxu1 %vm302_vm3, %v292_v48 }
 0x2b7   :  { %1729 = vmatmul.mubr.msk.f32.vlgmr.msra.gmra.mrb[6].mxu1 %vm298_vm4, %v297_v50  ;;  %1834 = vmatprep.subr.bf16.mxu1 %v1960_v0 }
 0x2b8   :  { %477 = vrot.lane.b32.xlu1 %v292_v48, %s1965_s23  ;;  %1737 = vmatprep.mubr.msk.f32.mxu1 %vm1961_vm0, %v1962_v4 }
 0x2ba   :  { %1940 = vrot.lane.b32.xlu0 %v1929_v47, %s1966_s3  ;;  %v1065_v47 = vld [vmem:[%s2440_s11 + $0x8] sm:$0xff] }
 0x2bc   :  { %563 = vrot.lane.b32.xlu1 %v292_v48, %s1966_s3  ;;  %v1067_v48 = vld [vmem:[%s2440_s11 + $0x18] sm:$0xff] }
 0x2bd   :  { %v1867_v50 = vpack.c.bf16 %v1067_v48, %v1065_v47 }
 0x324   :  { %v1931_v57 = vpop.permute.xlu0 %1930 }
 0x325   :  { %v1933_v58 = vunpack.i.h.bf16 %v1931_v57  ;;  %v1932_v59 = vunpack.i.l.bf16 %v1931_v57  ;;  %v1869_v57 = vpack.c.bf16 %v1066_v53, %v1064_v52 }
 0x326   :  { %v392_v2 = vpop.permute.xlu1 %391 }
 0x327   :  { %v1835_v60 = vpack.c.bf16 %v1933_v58, %v1932_v59  ;;  %v1871_v58 = vpack.c.bf16 %v1071_v55, %v1069_v54  ;;  %v1068_v59 = vld [vmem:[%s2440_s11 + $0x20] sm:$0xff] }
 0x328   :  { %v1936_v61 = vpop.permute.xlu0 %1935 }
 0x329   :  { %v1938_v62 = vunpack.i.h.bf16 %v1936_v61  ;;  %v1937_v63 = vunpack.i.l.bf16 %v1936_v61  ;;  %1836 = vmatpush3.bf16.msra.mxu1 %v1835_v60  ;;  %v1070_v60 = vld [vmem:[%s2440_s11 + $0x30] sm:$0xff]  ;;  %v1073_v61 = vld [vmem:[%s2440_s11 + $0x48] sm:$0xff] }
 0x32a   :  { %1735 = vmatprep.subr.mxu1 %v1962_v4  ;;  %v478_v8 = vpop.permute.xlu1 %477 }
 0x32b   :  { %v1838_v3 = vpack.c.bf16 %v1938_v62, %v1937_v63  ;;  %v1075_v62 = vld [vmem:[%s2440_s11 + $0x58] sm:$0xff]  ;;  %v1873_v63 = vpack.c.bf16 %v1070_v60, %v1068_v59  ;;  %v1275_v59 = vld [vmem:[%s2446_s14 + $0x8] sm:$0xff]  ;;  %v1276_v60 = vld [vmem:[%s2446_s14 + $0x10] sm:$0xff] }
 0x32c   :  { %v1941_v5 = vpop.permute.xlu0 %1940 }
 0x32d   :  { %1736 = vmatpush3.msk.msra.mxu1 %vm302_vm3, %v392_v2  ;;  %v1943_v6 = vunpack.i.h.bf16 %v1941_v5  ;;  %v1942_v7 = vunpack.i.l.bf16 %v1941_v5  ;;  %v1072_v2 = vld [vmem:[%s2440_s11 + $0x40] sm:$0xff] }
 0x32e   :  { %1738 = vmatmul.mubr.msk.f32.vlgmr.msra.gmra.mrb[6].mxu1 %vm298_vm4, %v1603_v1  ;;  %1837 = vmatprep.subr.bf16.mxu1 %v1960_v0  ;;  %v564_v11 = vpop.permute.xlu1 %563  ;;  %v1875_v1 = vpack.c.bf16 %v1075_v62, %v1073_v61  ;;  %v1277_v62 = vld [vmem:[%s2446_s14 + $0x18] sm:$0xff] }
 0x32f   :  { %1839 = vmatpush3.bf16.msra.mxu1 %v1838_v3  ;;  %1746 = vmatprep.mubr.msk.f32.mxu1 %vm1961_vm0, %v1962_v4  ;;  %v1841_v10 = vpack.c.bf16 %v1943_v6, %v1942_v7  ;;  %v1074_v3 = vld [vmem:[%s2440_s11 + $0x50] sm:$0xff] }
 0x330   :  { %1744 = vmatprep.subr.mxu1 %v1962_v4  ;;  %v1877_v5 = vpack.c.bf16 %v1074_v3, %v1072_v2  ;;  %v1279_v2 = vld [vmem:[%s2446_s14 + $0x28] sm:$0xff] }
 0x333   :  { %1745 = vmatpush3.msk.msra.mxu1 %vm302_vm3, %v478_v8  ;;  %v1077_v8 = vld [vmem:[%s2440_s11 + $0x68] sm:$0xff] }
 0x334   :  { %1840 = vmatprep.subr.bf16.mxu1 %v1960_v0 }
 0x336   :  { %1747 = vmatmul.mubr.msk.f32.vlgmr.msra.gmra.mrb[6].mxu1 %vm298_vm4, %v1606_v9  ;;  %v1079_v9 = vld [vmem:[%s2440_s11 + $0x78] sm:$0xff] }
 0x337   :  { %1842 = vmatpush3.bf16.msra.mxu1 %v1841_v10  ;;  %1755 = vmatprep.mubr.msk.f32.mxu1 %vm1961_vm0, %v1962_v4  ;;  %v1061_v10 = vld [vmem:[%s2439_s10 + $0x68] sm:$0xff] }
 0x338   :  { %1753 = vmatprep.subr.mxu1 %v1962_v4 }
 0x33b   :  { %1754 = vmatpush3.msk.msra.mxu1 %vm302_vm3, %v564_v11  ;;  %v1063_v11 = vld [vmem:[%s2439_s10 + $0x78] sm:$0xff] }
 0x33c   :  { %1758 = vmatprep.subr.mxu1 %v1962_v4  ;;  %v1863_v14 = vpack.c.bf16 %v1063_v11, %v1061_v10  ;;  %v1626_v10 = vld [vmem:[%s2447_s17] ss:$0 sm:$0xff] }
 0x33e   :  { %1756 = vmatmul.mubr.msk.f32.vlgmr.msra.gmra.mrb[6].mxu1 %vm298_vm4, %v1609_v12  ;;  %v1879_v12 = vpack.c.bf16 %v1079_v9, %v1077_v8 }
 0x33f   :  { %1760 = vmatprep.mubr.msk.f32.mxu1 %vm1961_vm0, %v1962_v4 }
 0x411   :  { %v638_v20 = vpop.f32.mrb[6].mxu1 }
 0x412   :  { %v1907_v21 = vadd.f32 %v1602_v19, %v638_v20  ;;  %v1757_v22 = vpop.f32.mrb[7].mxu1  ;;  %v1881_v19 = vpack.c.bf16 %v1078_v17, %v1076_v13  ;;  %v2329_v20 = vld [vmem:[%s2441_s1] sm:$0x3] }
 0x414   :  { %v643_v23 = vmax.f32 %v1907_v21, 0.0  ;;  %v1614_v21 = vld [vmem:[%s2442_s9] ss:$0 sm:$0xff] }
 0x416   :  { %1612 = vmatmul.mubr.msk.f32.vlgmr.msra.gmra.mrb[6].mxu0 %vm652_vm5, %v643_v23 }
 0x417   :  { %1765 = vmatprep.mubr.msk.f32.mxu0 %vm1961_vm0, %v1962_v4 }
 0x4e9   :  { %v722_v25 = vpop.f32.mrb[6].mxu0 }
 0x4ea   :  { %813 = vrot.lane.b32.xlu0 %v722_v25, %s1965_s23  ;;  %v724_v26 = vpop.f32.mrb[7].mxu0  ;;  %1759 = vmatpush3.msra.mxu1 %v722_v25 }
 0x4eb   :  { %969 = vrot.lane.b32.xlu1 %v724_v26, %s1965_s23  ;;  %1761 = vmatmul.mubr.msk.f32.vlgmr.msra.gmra.mrb[8].mxu1 %vm729_vm6, %v728_v24 }
 0x4ec   :  { %1161 = vmatprep.mubr.f32.mxu1 %v1962_v4  ;;  %1852 = vmatprep.subr.bf16.mxu1 %v1851_v29  ;;  %v1282_v29 = vld [vmem:[%s2443_s15] sm:$0xff] }
 0x4ed   :  { %1854 = vmatpush1.bf16.msra.mxu1 %v1853_v32  ;;  %v1896_v32 = vpack.c.bf16 %v1283_v30, %v1282_v29 }
 0x4ee   :  { %1856 = vmatprep.subr.bf16.mxu1 %v1855_v35 }
 0x4ef   :  { %1269 = vrot.lane.b32.xlu1 %v2329_v20, %s1965_s23 }
 0x4f1   :  { %1858 = vmatpush1.bf16.msra.mxu1 %v1857_v38  ;;  %v1085_v38 = vsub.s32 0, %v1084_v37 }
 0x4f2   :  { %1860 = vmatprep.subr.bf16.mxu1 %v1859_v41 }
 0x4f3   :  { %v1172_v41 = vrot.slane %v1081_v39, %v1085_v38  ;;  %v1086_v42 = vrot.slane %v1080_v40, %v1085_v38 }
 0x4f5   :  { %1862 = vmatpush1.bf16.msra.mxu1 %v1861_v44 }
 0x4f6   :  { %1864 = vmatprep.subr.bf16.mxu1 %v1863_v14 }
 0x4f9   :  { %1866 = vmatpush1.bf16.msra.mxu1 %v1865_v18 }
 0x4fa   :  { %1883 = vmatprep.subr.bf16.mxu1 %v1960_v0 }
 0x55c   :  { %v814_v46 = vpop.permute.xlu0 %813 }
 0x55d   :  { %1764 = vmatpush3.msra.mxu0 %v814_v46  ;;  %v970_v51 = vpop.permute.xlu1 %969 }
 0x55e   :  { %1766 = vmatmul.mubr.msk.f32.vlgmr.msra.gmra.mrb[8].mxu0 %vm729_vm6, %v1615_v45  ;;  %1768 = vmatprep.subr.mxu0 %v1962_v4 }
 0x55f   :  { %1769 = vmatpush3.msra.mxu0 %v724_v26  ;;  %1770 = vmatprep.mubr.msk.f32.mxu0 %vm1961_vm0, %v1962_v4 }
 0x560   :  { %1773 = vmatprep.subr.mxu0 %v1962_v4 }
 0x561   :  { %v1270_v35 = vpop.permute.xlu1 %1269 }
 0x566   :  { %1771 = vmatmul.mubr.msk.f32.vlgmr.msra.gmra.mrb[8].mxu0 %vm729_vm6, %v1617_v49 }
 0x567   :  { %1774 = vmatpush3.msra.mxu0 %v970_v51  ;;  %1775 = vmatprep.mubr.msk.f32.mxu0 %vm1961_vm0, %v1962_v4 }
 0x568   :  { %1868 = vmatprep.subr.bf16.mxu0 %v1867_v50  ;;  %v1089_v50 = vsub.s32 1, %v1084_v37 }
 0x56a   :  { %v1176_v51 = vrot.slane %v1081_v39, %v1089_v50  ;;  %v1090_v52 = vrot.slane %v1080_v40, %v1089_v50 }
 0x56e   :  { %1776 = vmatmul.mubr.msk.f32.vlgmr.msra.gmra.mrb[8].mxu0 %vm729_vm6, %v1619_v56 }
 0x56f   :  { %1870 = vmatpush1.bf16.msra.mxu0 %v1869_v57  ;;  %1246 = vmatprep.mubr.f32.mxu0 %v1962_v4 }
 0x570   :  { %1872 = vmatprep.subr.bf16.mxu0 %v1871_v58  ;;  %v1274_v58 = vld [vmem:[%s2446_s14] sm:$0xff] }
 0x571   :  { %v1884_v61 = vpack.c.bf16 %v1275_v59, %v1274_v58 }
 0x573   :  { %1874 = vmatpush1.bf16.msra.mxu0 %v1873_v63  ;;  %v1887_v63 = vpack.c.bf16 %v1277_v62, %v1276_v60 }
 0x574   :  { %1876 = vmatprep.subr.bf16.mxu0 %v1875_v1  ;;  %v1278_v1 = vld [vmem:[%s2446_s14 + $0x20] sm:$0xff] }
 0x577   :  { %1878 = vmatpush1.bf16.msra.mxu0 %v1877_v5  ;;  %v1890_v5 = vpack.c.bf16 %v1279_v2, %v1278_v1 }
 0x578   :  { %1880 = vmatprep.subr.bf16.mxu0 %v1879_v12 }
 0x57b   :  { %1882 = vmatpush1.bf16.msra.mxu0 %v1881_v19  ;;  %v1624_v19 = vld [vmem:[%s2448_s16] ss:$0 sm:$0xff] }
 0x57c   :  { %1895 = vmatprep.subr.bf16.mxu0 %v1960_v0 }
 0x57e   :  { %1622 = vmatmul.mubr.msk.f32.vlgmr.msra.gmra.mrb[10].mxu0 %vm1093_vm7, %v2329_v20 }
 0x57f   :  { %1805 = vmatprep.mubr.msk.f32.mxu0 %vm1961_vm0, %v1962_v4  ;;  %1897 = vmatpush3.bf16.msra.mxu0 %v1896_v32 }
 0x580   :  { %1898 = vmatprep.subr.bf16.mxu0 %v1960_v0 }
 0x583   :  { %1900 = vmatpush3.bf16.msra.mxu0 %v1899_v34  ;;  %v1477_v34 = vld [vmem:[%s2449_s18 + $0x8] sm:$0xff] }
 0x584   :  { %1901 = vmatprep.subr.bf16.mxu0 %v1960_v0  ;;  %v1902_v36 = vpack.c.bf16 %v1477_v34, %v1476_v33 }
 0x586   :  { %1806 = vmatmul.mubr.msk.f32.vlgmr.msra.gmra.mrb[12].mxu0 %vm652_vm5, %v1270_v35 }
 0x587   :  { %1816 = vmatprep.mubr.msk.f32.mxu0 %vm1961_vm0, %v1962_v4  ;;  %1903 = vmatpush3.bf16.msra.mxu0 %v1902_v36 }
 0x588   :  { %1904 = vmatprep.subr.bf16.mxu0 %v1960_v0 }
 0x5be   :  { %v799_v6 = vpop.f32.mrb[8].mxu1 }
 0x5bf   :  { %v1762_v7 = vpop.f32.mrb[9].mxu1  ;;  %v809_v22 = vadd.f32 %v1614_v21, %v799_v6  ;;  %v1280_v6 = vld [vmem:[%s2446_s14 + $0x30] sm:$0xff] }
 0x5c0   :  { %v1281_v7 = vld [vmem:[%s2446_s14 + $0x38] sm:$0xff] }
 0x5c1   :  { %v1893_v8 = vpack.c.bf16 %v1281_v7, %v1280_v6 }
 0x641   :  { %v1041_v23 = vpop.f32.mrb[8].mxu0 }
 0x642   :  { %v1909_v24 = vadd.f32 %v1041_v23, %v809_v22  ;;  %v1777_v25 = vpop.f32.mrb[9].mxu0 }
 0x644   :  { %v1046_v26 = vmax.f32 %v1909_v24, 0.0 }
 0x646   :  { %1621 = vmatmul.mubr.msk.f32.vlgmr.msra.gmra.mrb[10].mxu1 %vm1093_vm7, %v1046_v26 }
 0x647   :  { %1794 = vmatprep.mubr.msk.f32.mxu1 %vm1961_vm0, %v1962_v4  ;;  %1885 = vmatpush3.bf16.msra.mxu1 %v1884_v61 }
 0x648   :  { %1886 = vmatprep.subr.bf16.mxu1 %v1960_v0 }
 0x64b   :  { %1888 = vmatpush3.bf16.msra.mxu1 %v1887_v63 }
 0x64c   :  { %1889 = vmatprep.subr.bf16.mxu1 %v1960_v0 }
 0x64f   :  { %1891 = vmatpush3.bf16.msra.mxu1 %v1890_v5 }
 0x650   :  { %1892 = vmatprep.subr.bf16.mxu1 %v1960_v0 }
 0x651   :  { %v1248_v27 = vpop.f32.mrb[10].mxu0 }
 0x652   :  { %v1250_v28 = vpop.f32.mrb[11].mxu0  ;;  %v1249_v43 = vadd.f32 %v1248_v27, %v1172_v41 }
 0x653   :  { %v1251_v53 = vadd.f32 %v1250_v28, %v1176_v51  ;;  %1894 = vmatpush3.bf16.msra.mxu1 %v1893_v8 }
 0x659   :  { %v1443_v9 = vpop.f32.mrb[12].mxu0 }
 0x65a   :  { %v1807_v11 = vpop.f32.mrb[13].mxu0  ;;  %v1444_v12 = vadd.f32 %v1626_v10, %v1443_v9 }
 0x65c   :  { %1455 = vrot.lane.b32.xlu1 %v1444_v12, %s1965_s23 }
 0x6ce   :  { %v1456_v29 = vpop.permute.xlu1 %1455 }
 0x719   :  { %v1163_v44 = vpop.f32.mrb[10].mxu1 }
 0x71a   :  { %v1164_v45 = vadd.f32 %v1163_v44, %v1086_v42  ;;  %v1165_v46 = vpop.f32.mrb[11].mxu1 }
 0x71b   :  { %v1166_v55 = vadd.f32 %v1165_v46, %v1090_v52  ;;  %v1629_v46 = vld [vmem:[%s2450_s19] ss:$0 sm:$0xff] }
 0x71c   :  { %v1253_v47 = vadd.f32 %v1249_v43, %v1164_v45 }
 0x71e   :  { %v1623_v48 = vmul.f32 -1.442695, %v1253_v47 }
 0x720   :  { %1944 = vpow2.f32 %v1623_v48 }
 0x72a   :  { %v1945_v4 = vpop.eup %1944 }
 0x72b   :  { %v1257_v49 = vadd.f32 1.0, %v1945_v4 }
 0x72d   :  { %1946 = vrcp.f32 %v1257_v49 }
 0x737   :  { %v1947_v54 = vpop.eup %1946 }
 0x738   :  { %v1260_v56 = vmul.f32 %v1947_v54, %v1251_v53  ;;  %v1263_v13 = vsub.f32 1.0, %v1947_v54  ;;  %v1272_v15 = vmul.f32 %v1947_v54, %v1270_v35  ;;  %v1478_v35 = vld [vmem:[%s2449_s18 + $0x10] sm:$0xff] }
 0x73a   :  { %v1261_v57 = vadd.f32 %v1260_v56, %v1166_v55 }
 0x73c   :  { %1948 = vtanh.f32 %v1261_v57 }
 0x746   :  { %v1949_v3 = vpop.eup %1948 }
 0x747   :  { %1265 = vrot.lane.b32.xlu0 %v1949_v3, %s1965_s23 }
 0x7b9   :  { %v1266_v14 = vpop.permute.xlu0 %1265 }
 0x7ba   :  { %v1268_v16 = vmul.f32 %v1266_v14, %v1263_v13 }
 0x7bc   :  { %v1273_v17 = vadd.f32 %v1272_v15, %v1268_v16 }
 0x7be   :  { %1295 = vrot.lane.b32.xlu0 %v1273_v17, %s1965_s23 }
 0x830   :  { %v1296_v18 = vpop.permute.xlu0 %1295 }
 0x831   :  { %1795 = vmatmul.mubr.msk.f32.vlgmr.msra.gmra.mrb[12].mxu1 %vm1093_vm7, %v1296_v18 }
 0x904   :  { %v1365_v21 = vpop.f32.mrb[12].mxu1 }
 0x905   :  { %v1366_v22 = vadd.f32 %v1624_v19, %v1365_v21  ;;  %v1796_v23 = vpop.f32.mrb[13].mxu1 }
 0x907   :  { %v1447_v24 = vadd.f32 %v1444_v12, %v1366_v22 }
 0x909   :  { %v1628_v25 = vmul.f32 -1.442695, %v1447_v24 }
 0x90b   :  { %1950 = vpow2.f32 %v1628_v25 }
 0x915   :  { %v1951_v26 = vpop.eup %1950 }
 0x916   :  { %v1451_v27 = vadd.f32 1.0, %v1951_v26 }
 0x918   :  { %1952 = vrcp.f32 %v1451_v27 }
 0x922   :  { %v1953_v28 = vpop.eup %1952 }
 0x923   :  { %v1458_v30 = vmul.f32 %v1953_v28, %v1456_v29  ;;  %v1465_v40 = vsub.f32 1.0, %v1953_v28 }
 0x925   :  { %1460 = vrot.lane.b32.xlu0 %v1458_v30, %s1965_s23 }
 0x929   :  { %1471 = vrot.lane.b32.xlu0 %v2329_v20, %s1964_s21  ;;  %v1479_v20 = vld [vmem:[%s2449_s18 + $0x18] sm:$0xff] }
 0x92a   :  { %v1905_v37 = vpack.c.bf16 %v1479_v20, %v1478_v35 }
 0x92c   :  { %1906 = vmatpush3.bf16.msra.mxu0 %v1905_v37 }
 0x997   :  { %v1461_v31 = vpop.permute.xlu0 %1460 }
 0x998   :  { %v1463_v32 = vadd.f32 %v1461_v31, %v1366_v22 }
 0x99a   :  { %1954 = vtanh.f32 %v1463_v32 }
 0x99b   :  { %v1472_v39 = vpop.permute.xlu0 %1471 }
 0x99c   :  { %v1474_v42 = vmul.f32 %v1953_v28, %v1472_v39 }
 0x9a4   :  { %v1955_v38 = vpop.eup %1954 }
 0x9a5   :  { %1467 = vrot.lane.b32.xlu1 %v1955_v38, %s1964_s21 }
 0xa17   :  { %v1468_v41 = vpop.permute.xlu1 %1467 }
 0xa18   :  { %v1470_v43 = vmul.f32 %v1468_v41, %v1465_v40 }
 0xa1a   :  { %v1475_v44 = vadd.f32 %v1474_v42, %v1470_v43 }
 0xa1c   :  { %1488 = vrot.lane.b32.xlu1 %v1475_v44, %s1964_s21  ;;  %s1968_s21 = smov 40  }
 0xa8e   :  { %v1489_v45 = vpop.permute.xlu1 %1488 }
 0xa8f   :  { %1817 = vmatmul.mubr.msk.f32.vlgmr.msra.gmra.mrb[14].mxu0 %vm652_vm5, %v1489_v45 }
 0xb62   :  { %v1558_v0 = vpop.f32.mrb[14].mxu0 }
 0xb63   :  { %v1559_v47 = vadd.f32 %v1629_v46, %v1558_v0  ;;  %v1818_v48 = vpop.f32.mrb[15].mxu0 }
 0xb65   :  { %v1563_v4 = vsel %vm1562_vm8, %v1559_v47, -inf }
 0xb66   :  { %1564 = vmax.xlane.f32.xlu0 %v1563_v4 }
 0xb7c   :  { %1575 = vrot.lane.b32.xlu0 %v1273_v17, %s1967_s27 }
 0xbf3   :  { %v1565_v49 = vpop.xlane.xlu0 %1564 }
 0xbf4   :  { %v1566_v50 = vsub.f32 %v1559_v47, %v1565_v49 }
 0xbf6   :  { %v1567_v51 = vmul.f32 1.442695, %v1566_v50 }
 0xbf7   :  { %v1576_v58 = vpop.permute.xlu0 %1575 }
 0xbf8   :  { %1956 = vpow2.f32 %v1567_v51 }
 0xc02   :  { %v1957_v52 = vpop.eup %1956 }
 0xc03   :  { %v1569_v53 = vsel %vm1562_vm8, %v1957_v52, 0.0 }
 0xc04   :  { %1570 = vadd.xlane.f32.xlu1 %v1569_v53 }
 0xc15   :  { %1578 = vrot.lane.b32.xlu1 %v1475_v44, %s1968_s21 }
 0xc91   :  { %v1571_v54 = vpop.xlane.xlu1 %1570 }
 0xc92   :  { %1958 = vlog2.f32 %v1571_v54 }
 0xc95   :  { %v1579_v60 = vpop.permute.xlu1 %1578 }
 0xc9c   :  { %v1959_v55 = vpop.eup %1958 }
 0xc9d   :  { %v1573_v56 = vmul.f32 0.6931472, %v1959_v55 }
 0xc9f   :  { %v1574_v57 = vsub.f32 %v1566_v50, %v1573_v56 }
 0xca1   :  { %v1582_v59 = vsel %vm1581_vm9, %v1574_v57, %v1559_v47 }
 0xca2   :  { %v1583_v61 = vsel %vm729_vm6, %v1582_v59, %v1576_v58 }
 0xca3   :  { %v1585_v62 = vsel %vm1584_vm10, %v1583_v61, %v1579_v60 }
 0xca4   :  { %v1587_v63 = vsel %vm1586_vm11, %v1585_v62, 0.0 }
 0xca5   :  { %1588 = vst [vmem:[%s2451_s20] sm:$0x3] %v1587_v63 }

</bundles_post_ra>
